<compile_context>
chip_gen: v6e
topology: v6e:2x2x1
jax: 0.10.0
libtpu: 0.0.40
codegen_flags: <defaults>
</compile_context>

<pallas_src>
import functools

import jax
import jax.numpy as jnp
from jax.experimental import pallas as pl
from jax.experimental.pallas import tpu as pltpu


# ---------------------------------------------------------------------------
# Pallas kernel: one grid step = `block_batch` graphs, all heads fused inside.
# ---------------------------------------------------------------------------
def egat_layer_kernel(x_ref, wmask_ref, bigw_ref, bias_ref, out_ref, h_scratch,
                      *, num_heads, out_dim, n_nodes, block_batch):
    H, O, N = num_heads, out_dim, n_nodes
    HO = H * O
    D = x_ref.shape[-1]

    # Fused projection + attention logits for the whole batch block:
    # (Bb*N, D) @ (D, HO + 2H) -> (Bb*N, HO + 2H).  bf16 operands, f32 acc.
    # Columns [0:HO) = per-head projected features (head h = lane block h),
    # columns [HO:HO+H) = src logits, [HO+H:HO+2H) = dst logits.
    x2 = x_ref[...].reshape(block_batch * N, D)
    h_scratch[...] = jnp.dot(x2, bigw_ref[...],
                             preferred_element_type=jnp.float32)

    bias = bias_ref[...]                                  # (1, HO) f32

    @pl.loop(0, block_batch)
    def _(b):
        row0 = pl.multiple_of(b * N, N)
        hl = h_scratch[pl.ds(row0, N), :]                 # (N, HO + 2H) f32
        h_all = hl[:, :HO]                                # (N, HO)
        src = hl[:, HO:HO + H]                            # (N, H)
        dst_t = hl[:, HO + H:HO + 2 * H].T                # (H, N) one tiny transpose

        # Pre-masked edge bias: W where edge is valid, -1e30 elsewhere.
        wm = wmask_ref[b]                                 # (N, N) f32

        outs = []
        for hd in range(H):
            # additive attention logits  e[i, j] = src_h[i] + dst_h[j]
            e = src[:, hd:hd + 1] + dst_t[hd:hd + 1, :]   # (N, N)
            e = jnp.maximum(e, 0.2 * e)                   # leaky_relu(0.2), 1 vmax
            e = e + wm                                    # edge weight + mask fused

            # row softmax (reciprocal on the EUP; denom >= 1)
            m = jnp.max(e, axis=-1, keepdims=True)
            p = jnp.exp(e - m)
            denom = jnp.sum(p, axis=-1, keepdims=True)
            alpha = p * pl.reciprocal(denom, approx=True)  # (N, N)

            # aggregate neighbours  (N, N) @ (N, O) -> (N, O)  [MXU]
            outs.append(jnp.dot(alpha, h_all[:, hd * O:(hd + 1) * O],
                                preferred_element_type=jnp.float32))

        # concat heads, bias + relu once, single store for this graph
        out_b = jnp.concatenate(outs, axis=-1) + bias      # (N, HO)
        out_ref[b] = jnp.maximum(out_b, 0.0)


def _choose_block_batch(batch, n_nodes, row_target=256):
    """Batch-block size: fill the MXU (>= row_target rows) when possible while
    keeping >= 2 grid steps so v7x's two TensorCores both get work."""
    divisors = [d for d in range(1, batch + 1) if batch % d == 0]
    for d in divisors:                       # smallest divisor hitting target
        if d * n_nodes >= row_target:
            if batch // d >= 2:
                return d
            smaller = [s for s in divisors if batch // s >= 2]
            return smaller[-1] if smaller else d
    smaller = [s for s in divisors if batch // s >= 2]
    return smaller[-1] if smaller else batch


def egat_layer(x_bf16, w_masked, big_w, bias_flat, *, num_heads, out_dim,
               block_batch=None):
    """Single EGAT decoder layer. x_bf16:(B,N,D) -> (B,N,H*O) float32."""
    B, N, D = x_bf16.shape
    H = num_heads
    HO = H * out_dim
    if block_batch is None:
        block_batch = _choose_block_batch(B, N)
    assert B % block_batch == 0
    grid = (B // block_batch,)

    kernel = functools.partial(egat_layer_kernel, num_heads=H, out_dim=out_dim,
                               n_nodes=N, block_batch=block_batch)

    # Advisory cost hint for the XLA scheduler.
    cost = pl.CostEstimate(
        flops=(2 * B * N * D * (HO + 2 * H)      # fused projection + logits
               + 2 * B * H * N * N * out_dim     # attention aggregation
               + 8 * B * H * N * N),             # softmax / leaky-relu elementwise
        transcendentals=B * H * N * N,           # exp
        bytes_accessed=(B * N * N * 4            # W_masked (f32)
                        + B * N * D * 2          # x (bf16)
                        + B * N * HO * 4         # output (f32)
                        + D * (HO + 2 * H) * 2   # fused weights (bf16)
                        + HO * 4),               # bias
    )

    return pl.pallas_call(
        kernel,
        out_shape=jax.ShapeDtypeStruct((B, N, HO), jnp.float32),
        grid_spec=pltpu.PrefetchScalarGridSpec(
            num_scalar_prefetch=0,
            grid=grid,
            in_specs=[
                pl.BlockSpec((block_batch, N, D), lambda b: (b, 0, 0)),   # x (bf16)
                pl.BlockSpec((block_batch, N, N), lambda b: (b, 0, 0)),   # W_masked
                pl.BlockSpec((D, HO + 2 * H), lambda b: (0, 0)),          # fused weights
                pl.BlockSpec((1, HO), lambda b: (0, 0)),                  # bias (tiled)
            ],
            out_specs=pl.BlockSpec((block_batch, N, HO), lambda b: (b, 0, 0)),
            scratch_shapes=[
                pltpu.VMEM((block_batch * N, HO + 2 * H), jnp.float32),
            ],
        ),
        compiler_params=pltpu.CompilerParams(
            dimension_semantics=("parallel",)),   # grid split across v7x's 2 TCs
        cost_estimate=cost,
    )(x_bf16, w_masked, big_w, bias_flat)


# ---------------------------------------------------------------------------
# Module wrapper (EGATVAEdecoder with gnn_layers = 1)
# ---------------------------------------------------------------------------
class EGATVAEdecoderPallas:
    def __init__(self, emb_dim, gat_feat_dim, att_heads=4, seed=0):
        self.heads = att_heads
        self.in_dim = emb_dim
        self.out_dim = gat_feat_dim
        H, D, O = att_heads, emb_dim, gat_feat_dim

        k = jax.random.PRNGKey(seed)
        k1, k2, k3, k4 = jax.random.split(k, 4)
        scale = 1.0 / jnp.sqrt(jnp.float32(emb_dim))
        self.wh = jax.random.normal(k1, (H, D, O), jnp.float32) * scale
        self.a_src = jax.random.normal(k2, (H, 1, O), jnp.float32) * scale
        self.a_dst = jax.random.normal(k3, (H, 1, O), jnp.float32) * scale
        self.bias = jax.random.normal(k4, (1, O), jnp.float32) * 0.01

        # --- pre-fused parameters for the kernel (done once, on host) -------
        # (H, D, O) -> (D, H*O): column block h is head h's projection.
        wh_flat = jnp.transpose(self.wh, (1, 0, 2)).reshape(D, H * O)
        # Block-diagonal (H*O, 2H): cols [0:H) = a_src per head, [H:2H) = a_dst.
        attw = jnp.zeros((H * O, 2 * H), jnp.float32)
        for h in range(H):
            attw = attw.at[h * O:(h + 1) * O, h].set(self.a_src[h, 0])
            attw = attw.at[h * O:(h + 1) * O, H + h].set(self.a_dst[h, 0])
        # Fold the logit matmul into the projection weight: one MXU pass in
        # the kernel produces [h_all | src | dst].  bf16 for the MXU path.
        logit_w = wh_flat @ attw                                   # (D, 2H)
        self.big_w = jnp.concatenate([wh_flat, logit_w], axis=1).astype(
            jnp.bfloat16)                                          # (D, H*O+2H)
        # bias shared across heads -> tiled to (1, H*O) for the fused add.
        self.bias_flat = jnp.tile(self.bias, (1, H))

    def __call__(self, doc_sents_h, doc_len, adj, s_mask, W):
        batch, max_doc_len, _ = doc_sents_h.shape
        assert int(max(doc_len)) == max_doc_len
        # Pre-fuse adj / s_mask / W into a single edge-bias input (saves DMA;
        # masked entries stay exactly -1e30 after the in-kernel add because the
        # O(1) logit is absorbed in f32).
        w_masked = jnp.where((adj * s_mask) > 0.0,
                             W.astype(jnp.float32), jnp.float32(-1e30))
        x_bf16 = doc_sents_h.astype(jnp.bfloat16)     # bf16 MXU operand / DMA
        # single GNN layer (self.gnn_layers == 1)
        return egat_layer(x_bf16, w_masked, self.big_w, self.bias_flat,
                          num_heads=self.heads, out_dim=self.out_dim)

    # pure-JAX f32 reference for correctness checking (original semantics).
    def reference(self, x, adj, s_mask, W):
        h = jnp.einsum("bnd,hdo->bhno", x, self.wh)                 # (B,H,N,O)
        src = jnp.sum(h * self.a_src[None, :, :, :], axis=-1)       # (B,H,N)
        dst = jnp.sum(h * self.a_dst[None, :, :, :], axis=-1)       # (B,H,N)
        e = src[:, :, :, None] + dst[:, :, None, :]                 # (B,H,N,N)
        e = jnp.where(e > 0, e, 0.2 * e)
        e = e + W[:, None, :, :]
        mask = (adj * s_mask)[:, None, :, :] > 0
        e = jnp.where(mask, e, -1e30)
        alpha = jax.nn.softmax(e, axis=-1)
        out = jnp.einsum("bhij,bhjo->bhio", alpha, h)               # (B,H,N,O)
        out = jnp.maximum(out + self.bias[None, None, :, :], 0.0)
        B, H, N, O = out.shape
        return jnp.transpose(out, (0, 2, 1, 3)).reshape(B, N, H * O)


if __name__ == "__main__":
    # small shapes: batch=2, max_doc_len(seq)=8, emb_dim=32, gat_feat_dim=16
    B, N, D, F = 2, 8, 32, 16
    key = jax.random.PRNGKey(0)
    kx, ka, km, kw = jax.random.split(key, 4)

    doc_sents_h = jax.random.normal(kx, (B, N, D), jnp.float32)
    doc_len = [N, N]  # every doc fully populated -> max(doc_len) == N
    # adjacency / speaker mask: binary, with self-loops so no row is empty
    adj = (jax.random.uniform(ka, (B, N, N)) > 0.4).astype(jnp.float32)
    adj = jnp.maximum(adj, jnp.eye(N, dtype=jnp.float32)[None])
    s_mask = (jax.random.uniform(km, (B, N, N)) > 0.3).astype(jnp.float32)
    s_mask = jnp.maximum(s_mask, jnp.eye(N, dtype=jnp.float32)[None])
    W_edge = jax.random.normal(kw, (B, N, N), jnp.float32) * 0.1

    model = EGATVAEdecoderPallas(emb_dim=D, gat_feat_dim=F, att_heads=4, seed=0)

    out = model(doc_sents_h, doc_len, adj, s_mask, W_edge)
    out = jax.block_until_ready(out)

    ref = model.reference(doc_sents_h, adj, s_mask, W_edge)
    assert out.shape == (B, N, 4 * F), out.shape
    # Tolerance accounts for bf16 MXU operands (projection / logit dot) and the
    # EUP approximate reciprocal (~2^-12 relative) in the softmax; all other
    # math is f32.  Observed error is ~1e-2 absolute at these magnitudes.
    assert jnp.allclose(out, ref, atol=5e-2, rtol=5e-2), \
        float(jnp.max(jnp.abs(out - ref)))

    print("KERNEL_OK")
</pallas_src>

<mosaic_0001>
module attributes {stable_mosaic.version = 11 : i64} {
  func.func @egat_layer_kernel(%arg0: i32, %arg1: memref<1x8x32xbf16, #tpu.memory_space<vmem>>, %arg2: memref<1x8x8xf32, #tpu.memory_space<vmem>>, %arg3: memref<32x72xbf16, #tpu.memory_space<vmem>>, %arg4: memref<1x64xf32, #tpu.memory_space<vmem>>, %arg5: memref<1x8x64xf32, #tpu.memory_space<vmem>>, %arg6: memref<8x72xf32, #tpu.memory_space<vmem>>) attributes {dimension_semantics = [#tpu.dimension_semantics<parallel>], iteration_bounds = array<i64: 2>, scalar_prefetch = 0 : i64, scratch_operands = 1 : i64, tpu.core_type = #tpu.core_type<tc>, window_params = [{transform_indices = @transform_0, window_bounds = array<i64: 1, 8, 32>}, {transform_indices = @transform_1, window_bounds = array<i64: 1, 8, 8>}, {pipeline_mode = #tpu.pipeline_mode<synchronous>, transform_indices = @transform_2, window_bounds = array<i64: 32, 72>}, {pipeline_mode = #tpu.pipeline_mode<synchronous>, transform_indices = @transform_3, window_bounds = array<i64: 1, 64>}, {transform_indices = @transform_4, window_bounds = array<i64: 1, 8, 64>}]} {
    %c0 = arith.constant 0 : index
    %c0_0 = arith.constant 0 : index
    %c0_1 = arith.constant 0 : index
    %0 = vector.load %arg1[%c0, %c0_0, %c0_1] : memref<1x8x32xbf16, #tpu.memory_space<vmem>>, vector<1x8x32xbf16>
    %1 = vector.shape_cast %0 : vector<1x8x32xbf16> to vector<8x32xbf16>
    %c0_2 = arith.constant 0 : index
    %c0_3 = arith.constant 0 : index
    %2 = vector.load %arg3[%c0_2, %c0_3] : memref<32x72xbf16, #tpu.memory_space<vmem>>, vector<32x72xbf16>
    %cst = arith.constant dense<0.000000e+00> : vector<8x72xf32>
    %3 = tpu.matmul %1, %2, %cst {dimension_numbers = #tpu.dot_dimension_numbers<[1], [0], [0], [1], [0, 0, 1, 1], [], []>} : vector<8x32xbf16>, vector<32x72xbf16>, vector<8x72xf32> -> vector<8x72xf32>
    %c0_4 = arith.constant 0 : index
    %c0_5 = arith.constant 0 : index
    %4 = vector.load %arg6[%c0_4, %c0_5] : memref<8x72xf32, #tpu.memory_space<vmem>>, vector<8x72xf32>
    tpu.vector_store %arg6[%c0_4, %c0_5], %3 {strides = array<i32>} : memref<8x72xf32, #tpu.memory_space<vmem>>, vector<8x72xf32>,
    %c0_6 = arith.constant 0 : index
    %c0_7 = arith.constant 0 : index
    %5 = vector.load %arg4[%c0_6, %c0_7] : memref<1x64xf32, #tpu.memory_space<vmem>>, vector<1x64xf32>
    %c0_i32 = arith.constant 0 : i32
    %c1_i32 = arith.constant 1 : i32
    %6 = arith.muli %c0_i32, %c1_i32 : i32
    %c0_i32_8 = arith.constant 0 : i32
    %7 = arith.addi %c0_i32_8, %6 : i32
    %c8_i32 = arith.constant 8 : i32
    %8 = arith.muli %7, %c8_i32 : i32
    %9 = tpu.assume_multiple %8, 8 : i32
    %10 = arith.index_cast %9 : i32 to index
    %c0_9 = arith.constant 0 : index
    %11 = vector.load %arg6[%10, %c0_9] : memref<8x72xf32, #tpu.memory_space<vmem>>, vector<8x72xf32>
    %12 = vector.extract_strided_slice %11 {offsets = [0, 0], sizes = [8, 64], strides = [1, 1]} : vector<8x72xf32> to vector<8x64xf32>
    %13 = vector.extract_strided_slice %11 {offsets = [0, 64], sizes = [8, 4], strides = [1, 1]} : vector<8x72xf32> to vector<8x4xf32>
    %14 = vector.extract_strided_slice %11 {offsets = [0, 68], sizes = [8, 4], strides = [1, 1]} : vector<8x72xf32> to vector<8x4xf32>
    %15 = tpu.transpose %14, [1, 0] : vector<8x4xf32> -> vector<4x8xf32>
    %16 = arith.index_cast %7 : i32 to index
    %c0_10 = arith.constant 0 : index
    %c0_11 = arith.constant 0 : index
    %17 = vector.load %arg2[%16, %c0_10, %c0_11] : memref<1x8x8xf32, #tpu.memory_space<vmem>>, vector<1x8x8xf32>
    %18 = vector.shape_cast %17 : vector<1x8x8xf32> to vector<8x8xf32>
    %19 = vector.extract_strided_slice %13 {offsets = [0, 0], sizes = [8, 1], strides = [1, 1]} : vector<8x4xf32> to vector<8x1xf32>
    %20 = vector.extract_strided_slice %15 {offsets = [0, 0], sizes = [1, 8], strides = [1, 1]} : vector<4x8xf32> to vector<1x8xf32>
    %21 = vector.broadcast %19 : vector<8x1xf32> to vector<8x8xf32>
    %22 = vector.broadcast %20 : vector<1x8xf32> to vector<8x8xf32>
    %23 = arith.addf %21, %22 : vector<8x8xf32>
    %cst_12 = arith.constant 2.000000e-01 : f32
    %24 = vector.broadcast %cst_12 : f32 to vector<8x8xf32>
    %25 = arith.mulf %24, %23 : vector<8x8xf32>
    %26 = arith.maximumf %23, %25 : vector<8x8xf32>
    %27 = arith.addf %26, %18 : vector<8x8xf32>
    %cst_13 = arith.constant dense<0xFF800000> : vector<8xf32>
    %28 = vector.multi_reduction <maximumf>, %27, %cst_13 [1] : vector<8x8xf32> to vector<8xf32>
    %29 = vector.shape_cast %28 : vector<8xf32> to vector<8x1xf32>
    %30 = vector.broadcast %29 : vector<8x1xf32> to vector<8x8xf32>
    %31 = arith.subf %27, %30 : vector<8x8xf32>
    %32 = math.exp %31 : vector<8x8xf32>
    %cst_14 = arith.constant dense<0.000000e+00> : vector<8xf32>
    %33 = vector.multi_reduction <add>, %32, %cst_14 [1] : vector<8x8xf32> to vector<8xf32>
    %34 = vector.shape_cast %33 : vector<8xf32> to vector<8x1xf32>
    %35 = tpu.reciprocal %34 {approx = true} : vector<8x1xf32> -> vector<8x1xf32>
    %36 = vector.broadcast %35 : vector<8x1xf32> to vector<8x8xf32>
    %37 = arith.mulf %32, %36 : vector<8x8xf32>
    %38 = vector.extract_strided_slice %12 {offsets = [0, 0], sizes = [8, 16], strides = [1, 1]} : vector<8x64xf32> to vector<8x16xf32>
    %cst_15 = arith.constant dense<0.000000e+00> : vector<8x16xf32>
    %39 = tpu.matmul %37, %38, %cst_15 {dimension_numbers = #tpu.dot_dimension_numbers<[1], [0], [0], [1], [0, 0, 1, 1], [], []>} : vector<8x8xf32>, vector<8x16xf32>, vector<8x16xf32> -> vector<8x16xf32>
    %40 = vector.extract_strided_slice %13 {offsets = [0, 1], sizes = [8, 1], strides = [1, 1]} : vector<8x4xf32> to vector<8x1xf32>
    %41 = vector.extract_strided_slice %15 {offsets = [1, 0], sizes = [1, 8], strides = [1, 1]} : vector<4x8xf32> to vector<1x8xf32>
    %42 = vector.broadcast %40 : vector<8x1xf32> to vector<8x8xf32>
    %43 = vector.broadcast %41 : vector<1x8xf32> to vector<8x8xf32>
    %44 = arith.addf %42, %43 : vector<8x8xf32>
    %cst_16 = arith.constant 2.000000e-01 : f32
    %45 = vector.broadcast %cst_16 : f32 to vector<8x8xf32>
    %46 = arith.mulf %45, %44 : vector<8x8xf32>
    %47 = arith.maximumf %44, %46 : vector<8x8xf32>
    %48 = arith.addf %47, %18 : vector<8x8xf32>
    %cst_17 = arith.constant dense<0xFF800000> : vector<8xf32>
    %49 = vector.multi_reduction <maximumf>, %48, %cst_17 [1] : vector<8x8xf32> to vector<8xf32>
    %50 = vector.shape_cast %49 : vector<8xf32> to vector<8x1xf32>
    %51 = vector.broadcast %50 : vector<8x1xf32> to vector<8x8xf32>
    %52 = arith.subf %48, %51 : vector<8x8xf32>
    %53 = math.exp %52 : vector<8x8xf32>
    %cst_18 = arith.constant dense<0.000000e+00> : vector<8xf32>
    %54 = vector.multi_reduction <add>, %53, %cst_18 [1] : vector<8x8xf32> to vector<8xf32>
    %55 = vector.shape_cast %54 : vector<8xf32> to vector<8x1xf32>
    %56 = tpu.reciprocal %55 {approx = true} : vector<8x1xf32> -> vector<8x1xf32>
    %57 = vector.broadcast %56 : vector<8x1xf32> to vector<8x8xf32>
    %58 = arith.mulf %53, %57 : vector<8x8xf32>
    %59 = vector.extract_strided_slice %12 {offsets = [0, 16], sizes = [8, 16], strides = [1, 1]} : vector<8x64xf32> to vector<8x16xf32>
    %cst_19 = arith.constant dense<0.000000e+00> : vector<8x16xf32>
    %60 = tpu.matmul %58, %59, %cst_19 {dimension_numbers = #tpu.dot_dimension_numbers<[1], [0], [0], [1], [0, 0, 1, 1], [], []>} : vector<8x8xf32>, vector<8x16xf32>, vector<8x16xf32> -> vector<8x16xf32>
    %61 = vector.extract_strided_slice %13 {offsets = [0, 2], sizes = [8, 1], strides = [1, 1]} : vector<8x4xf32> to vector<8x1xf32>
    %62 = vector.extract_strided_slice %15 {offsets = [2, 0], sizes = [1, 8], strides = [1, 1]} : vector<4x8xf32> to vector<1x8xf32>
    %63 = vector.broadcast %61 : vector<8x1xf32> to vector<8x8xf32>
    %64 = vector.broadcast %62 : vector<1x8xf32> to vector<8x8xf32>
    %65 = arith.addf %63, %64 : vector<8x8xf32>
    %cst_20 = arith.constant 2.000000e-01 : f32
    %66 = vector.broadcast %cst_20 : f32 to vector<8x8xf32>
    %67 = arith.mulf %66, %65 : vector<8x8xf32>
    %68 = arith.maximumf %65, %67 : vector<8x8xf32>
    %69 = arith.addf %68, %18 : vector<8x8xf32>
    %cst_21 = arith.constant dense<0xFF800000> : vector<8xf32>
    %70 = vector.multi_reduction <maximumf>, %69, %cst_21 [1] : vector<8x8xf32> to vector<8xf32>
    %71 = vector.shape_cast %70 : vector<8xf32> to vector<8x1xf32>
    %72 = vector.broadcast %71 : vector<8x1xf32> to vector<8x8xf32>
    %73 = arith.subf %69, %72 : vector<8x8xf32>
    %74 = math.exp %73 : vector<8x8xf32>
    %cst_22 = arith.constant dense<0.000000e+00> : vector<8xf32>
    %75 = vector.multi_reduction <add>, %74, %cst_22 [1] : vector<8x8xf32> to vector<8xf32>
    %76 = vector.shape_cast %75 : vector<8xf32> to vector<8x1xf32>
    %77 = tpu.reciprocal %76 {approx = true} : vector<8x1xf32> -> vector<8x1xf32>
    %78 = vector.broadcast %77 : vector<8x1xf32> to vector<8x8xf32>
    %79 = arith.mulf %74, %78 : vector<8x8xf32>
    %80 = vector.extract_strided_slice %12 {offsets = [0, 32], sizes = [8, 16], strides = [1, 1]} : vector<8x64xf32> to vector<8x16xf32>
    %cst_23 = arith.constant dense<0.000000e+00> : vector<8x16xf32>
    %81 = tpu.matmul %79, %80, %cst_23 {dimension_numbers = #tpu.dot_dimension_numbers<[1], [0], [0], [1], [0, 0, 1, 1], [], []>} : vector<8x8xf32>, vector<8x16xf32>, vector<8x16xf32> -> vector<8x16xf32>
    %82 = vector.extract_strided_slice %13 {offsets = [0, 3], sizes = [8, 1], strides = [1, 1]} : vector<8x4xf32> to vector<8x1xf32>
    %83 = vector.extract_strided_slice %15 {offsets = [3, 0], sizes = [1, 8], strides = [1, 1]} : vector<4x8xf32> to vector<1x8xf32>
    %84 = vector.broadcast %82 : vector<8x1xf32> to vector<8x8xf32>
    %85 = vector.broadcast %83 : vector<1x8xf32> to vector<8x8xf32>
    %86 = arith.addf %84, %85 : vector<8x8xf32>
    %cst_24 = arith.constant 2.000000e-01 : f32
    %87 = vector.broadcast %cst_24 : f32 to vector<8x8xf32>
    %88 = arith.mulf %87, %86 : vector<8x8xf32>
    %89 = arith.maximumf %86, %88 : vector<8x8xf32>
    %90 = arith.addf %89, %18 : vector<8x8xf32>
    %cst_25 = arith.constant dense<0xFF800000> : vector<8xf32>
    %91 = vector.multi_reduction <maximumf>, %90, %cst_25 [1] : vector<8x8xf32> to vector<8xf32>
    %92 = vector.shape_cast %91 : vector<8xf32> to vector<8x1xf32>
    %93 = vector.broadcast %92 : vector<8x1xf32> to vector<8x8xf32>
    %94 = arith.subf %90, %93 : vector<8x8xf32>
    %95 = math.exp %94 : vector<8x8xf32>
    %cst_26 = arith.constant dense<0.000000e+00> : vector<8xf32>
    %96 = vector.multi_reduction <add>, %95, %cst_26 [1] : vector<8x8xf32> to vector<8xf32>
    %97 = vector.shape_cast %96 : vector<8xf32> to vector<8x1xf32>
    %98 = tpu.reciprocal %97 {approx = true} : vector<8x1xf32> -> vector<8x1xf32>
    %99 = vector.broadcast %98 : vector<8x1xf32> to vector<8x8xf32>
    %100 = arith.mulf %95, %99 : vector<8x8xf32>
    %101 = vector.extract_strided_slice %12 {offsets = [0, 48], sizes = [8, 16], strides = [1, 1]} : vector<8x64xf32> to vector<8x16xf32>
    %cst_27 = arith.constant dense<0.000000e+00> : vector<8x16xf32>
    %102 = tpu.matmul %100, %101, %cst_27 {dimension_numbers = #tpu.dot_dimension_numbers<[1], [0], [0], [1], [0, 0, 1, 1], [], []>} : vector<8x8xf32>, vector<8x16xf32>, vector<8x16xf32> -> vector<8x16xf32>
    %103 = tpu.concatenate %39, %60, %81, %102 in 1 : vector<8x16xf32>, vector<8x16xf32>, vector<8x16xf32>, vector<8x16xf32> -> vector<8x64xf32>
    %104 = vector.broadcast %5 : vector<1x64xf32> to vector<8x64xf32>
    %105 = arith.addf %103, %104 : vector<8x64xf32>
    %cst_28 = arith.constant 0.000000e+00 : f32
    %106 = vector.broadcast %cst_28 : f32 to vector<8x64xf32>
    %107 = arith.maximumf %105, %106 : vector<8x64xf32>
    %108 = arith.index_cast %7 : i32 to index
    %c0_29 = arith.constant 0 : index
    %c0_30 = arith.constant 0 : index
    %109 = vector.load %arg5[%108, %c0_29, %c0_30] : memref<1x8x64xf32, #tpu.memory_space<vmem>>, vector<1x8x64xf32>
    %110 = vector.shape_cast %109 : vector<1x8x64xf32> to vector<8x64xf32>
    %111 = vector.shape_cast %107 : vector<8x64xf32> to vector<1x8x64xf32>
    tpu.vector_store %arg5[%108, %c0_29, %c0_30], %111 {strides = array<i32>} : memref<1x8x64xf32, #tpu.memory_space<vmem>>, vector<1x8x64xf32>,
    %c1_i32_31 = arith.constant 1 : i32
    return
  }
  func.func @transform_0(%arg0: i32) -> (i32, i32, i32) {
    %c0_i32 = arith.constant 0 : i32
    %c0_i32_0 = arith.constant 0 : i32
    %c0_i32_1 = arith.constant 0 : i32
    return %arg0, %c0_i32, %c0_i32_0 : i32, i32, i32
  }
  func.func @transform_1(%arg0: i32) -> (i32, i32, i32) {
    %c0_i32 = arith.constant 0 : i32
    %c0_i32_0 = arith.constant 0 : i32
    %c0_i32_1 = arith.constant 0 : i32
    return %arg0, %c0_i32, %c0_i32_0 : i32, i32, i32
  }
  func.func @transform_2(%arg0: i32) -> (i32, i32) {
    %c0_i32 = arith.constant 0 : i32
    %c0_i32_0 = arith.constant 0 : i32
    %c0_i32_1 = arith.constant 0 : i32
    return %c0_i32, %c0_i32_0 : i32, i32
  }
  func.func @transform_3(%arg0: i32) -> (i32, i32) {
    %c0_i32 = arith.constant 0 : i32
    %c0_i32_0 = arith.constant 0 : i32
    %c0_i32_1 = arith.constant 0 : i32
    return %c0_i32, %c0_i32_0 : i32, i32
  }
  func.func @transform_4(%arg0: i32) -> (i32, i32, i32) {
    %c0_i32 = arith.constant 0 : i32
    %c0_i32_0 = arith.constant 0 : i32
    %c0_i32_1 = arith.constant 0 : i32
    return %arg0, %c0_i32, %c0_i32_0 : i32, i32, i32
  }
}

</mosaic_0001>

<bundles_post_ra>
// kernel: tpu_custom_call.1
= control target key start
LH: loop header
LB: loop body
LE: loop exit
PB: predicated region body
PF: predicated region fallthrough
CT: control target
= control target key end

     0   :  { %9 = vsyncpa [#allocation4], 0  ;;  %s1517_s0 = inlined_call_operand.hbm [shape: bf16[2,8,32], index: 0, kind: input, shape index: {}]   ;;  %s1518_s1 = inlined_call_operand.hbm [shape: f32[2,8,8], index: 1, kind: input, shape index: {}]   ;;  %s1519_s2 = inlined_call_operand.hbm [shape: bf16[32,72], index: 2, kind: input, shape index: {}]   ;;  %s1520_s3 = inlined_call_operand.vmem [shape: f32[1,64], index: 3, kind: input, shape index: {}]   ;;  %s1521_s4 = inlined_call_operand.hbm [shape: f32[2,8,64], index: 4, kind: output, shape index: {}]  }
   0x1   :  { %11 = vsyncpa [#allocation4 + $0x1], 0 }
   0x2   :  { %12 = vsyncpa [#allocation7], 0 }
   0x3   :  { %14 = vsyncpa [#allocation7 + $0x1], 0 }
   0x4   :  { %15 = vsyncpa [#allocation5], 0 }
   0x5   :  { %17 = vsyncpa [#allocation5 + $0x1], 0  ;;  %s1268_s15 = smov 0   ;;  %s1270_s16 = smov 0  }
   0x6   :  { %s1272_s17 = smov 0   ;;  %s1274_s18 = smov 0  }
   0x7 LB: > { %s1289_s19 = sadd.s32 4294967295, %s1222_s18   ;;  %s904_s20 = sadd.s32 4294967294, %s1222_s18   ;;  %s1222_s18 = sphi %s1274_s18, %s1543_s18   ;;  %s1218_s17 = sphi %s1272_s17, %s1542_s17   ;;  %s1214_s16 = sphi %s1270_s16, %s1541_s16   ;;  %s1210_s15 = sphi %s1268_s15, %s1540_s15  }
   0x8   : > { %p43_p0 = scmp.ne.s32.totalorder %s1214_s16, %s1210_s15  ;;  %p1522_p1 = scmp.eq.s32.totalorder %s1289_s19, 0 }
   0x9   : > { %p141_p3 = scmp.eq.s32.totalorder %s904_s20, 1  ;;  %p905_p5 = scmp.ge.s32.totalorder %s1222_s18, 1 }
   0xa   : > { %p1298_p4 = por %p1522_p1, %p43_p0  ;;  %p148_p7 = scmp.lt.s32.totalorder %s1222_s18, 3 }
   0xb   : > { %p1303_p6 = por %p141_p3, %p43_p0  ;;  %s1224_s24 = smov [#allocation8]  }
   0xc   : > { %s1526_s21 = scalar_select %p1298_p4, 1, 0 }
   0xd   : > { %s1527_s22 = scalar_select %p1303_p6, 1, 0 }
   0xe   : > { %p1308_p8 = pnand %p905_p5, %p148_p7  ;;  %s160_s25 = sshll.u32 %s1224_s24, 4  ;;  %s161_s25 = int_to_ptr.vmem [resolvable:$true] %s160_s25 }
   0xf   : > { %s1322_s27 = sadd.s32 1, %s1222_s18   ;;  %s30_s28 = sadd.s32 1, %s1218_s17 }
  0x10   : > { %s1528_s23 = scalar_select %p1308_p8, 1, 0 }
  0x11   : > { %p978_p9 = pneg %p1308_p8  ;;  %s27_s29 = ssub.s32 %s1222_s18, %s1322_s27 }
  0x12   : > { %s1079_s30 = scalar_lea.vmem %s161_s25, 256  ;;  %p1087_p5 = scmp.lt.s32.totalorder %s161_s25, %s161_s25 }
  0x13   : > { %p1317_p11 = pnand %p978_p9, %p1522_p1  ;;  %p1080_p13 = scmp.ne.s32.totalorder %s161_s25, %s1079_s30 }
  0x14   : > { %p1088_p7 = scmp.lt.s32.totalorder %s1079_s30, %s1079_s30 }
  0x15   : > { %p1070_p12 = pneg %p1317_p11 }
  0x16   : > { %p1089_p10 = por %p1088_p7, %p1087_p5 }
  0x17   : > { %p1082_p0 = pnand %p1080_p13, %p1070_p12 }
  0x19   : > { %p1083_p3 = pneg %p1082_p0 }
  0x1b   : > { %p1090_p2 = pnand %p1089_p10, %p1083_p3 }
  0x1d   : > { %1093 = shalt.err (!%p1090_p2)
}
  0x1e   : > { %s1225_s5 = smov 64   ;;  %s1226_s6 = smov 4  }
  0x1f   : > { %981 = dma.hbm_to_vmem [thread:$0]  (!%p1317_p11), %s1519_s2, 256, %s161_s25, [#allocation7], %s1225_s5, %s1225_s5, %s1226_s6  }
  0x20   : > { %p28_p9 = scmp.eq.s32.totalorder %s27_s29, 0  ;;  %p37_p10 = scmp.ne.s32.totalorder %s1218_s17, %s1214_s16 }
  0x21   : > { %p38_p2 = scmp.eq.s32.totalorder %s1222_s18, 0  ;;  %p994_p12 = scmp.lt.s32.totalorder %s1222_s18, 2 }
  0x22   : > { %s1339_s9 = scalar_select %p28_p9, %s1218_s17, %s30_s28  }
  0x23   : > { %p39_p13 = por %p38_p2, %p37_p10  ;;  %p1530_p0 = scmp.eq.s32.totalorder %s1289_s19, 1 }
  0x24   : > { %s1348_s11 = sand.u32 1, %s1218_s17   ;;  %s909_s12 = sshll.u32 %s1222_s18, 6 }
  0x25   : > { %p1343_p3 = por %p1530_p0, %p37_p10  ;;  %s908_s13 = sshll.u32 %s1348_s11, 2 }
  0x26   : > { %s1355_s24 = scalar_lea.hbm %s1517_s0, %s909_s12  ;;  %s181_s25 = scalar_lea.vmem [#allocation3], %s908_s13 }
  0x27   : > { %s1531_s10 = scalar_select %p1343_p3, 1, 0 }
  0x28   : > { %s188_s26 = sshll.u32 %s181_s25, 4  ;;  %p1357_p11 = pnand %p994_p12, %p39_p13  ;;  %s189_s26 = int_to_ptr.vmem [resolvable:$true] %s188_s26 }
  0x29   : > { %s195_s29 = sand.u32 1, %s1222_s18   ;;  %s178_s30 = scalar_lea.sflag [#allocation4], %s1348_s11 }
  0x2a   : > { %s1094_s5 = scalar_lea.hbm %s1355_s24, 64  ;;  %p1096_p7 = pneg %p1357_p11 }
  0x2b   : > { %p1095_p5 = scmp.ne.s32.totalorder %s1355_s24, %s1094_s5  ;;  %s1099_s8 = scalar_lea.hbm %s1517_s0, 128 }
  0x2c   : > { %p1100_p2 = scmp.lt.s32.totalorder %s1355_s24, %s1517_s0  ;;  %p1101_p12 = scmp.lt.s32.totalorder %s1099_s8, %s1094_s5 }
  0x2d   : > { %p1097_p9 = pnand %p1096_p7, %p1095_p5 }
  0x2e   : > { %p1102_p13 = por %p1101_p12, %p1100_p2 }
  0x2f   : > { %p1098_p10 = pneg %p1097_p9 }
  0x31   : > { %p1103_p0 = pnand %p1102_p13, %p1098_p10 }
  0x33   : > { %1106 = shalt.err (!%p1103_p0)
}
  0x34   : > { %s1107_s14 = scalar_lea.vmem %s189_s26, 64  ;;  %s1227_s20 = smov [#allocation3]  }
  0x35   : > { %p1108_p1 = scmp.ne.s32.totalorder %s189_s26, %s1107_s14  ;;  %s1112_s25 = sshll.u32 %s1227_s20, 4  ;;  %s1113_s25 = int_to_ptr.vmem [resolvable:$false] %s1112_s25 }
  0x36   : > { %s1114_s6 = scalar_lea.vmem %s1113_s25, 128  ;;  %p1115_p9 = scmp.lt.s32.totalorder %s189_s26, %s1113_s25 }
  0x37   : > { %p1110_p6 = pnand %p1108_p1, %p1096_p7  ;;  %p1116_p3 = scmp.lt.s32.totalorder %s1114_s6, %s1107_s14 }
  0x39   : > { %p1111_p5 = pneg %p1110_p6  ;;  %p1117_p4 = por %p1116_p3, %p1115_p9 }
  0x3b   : > { %p1118_p8 = pnand %p1117_p4, %p1111_p5 }
  0x3d   : > { %1121 = shalt.err (!%p1118_p8)
}
  0x3e   : > { %985 = dma.hbm_to_vmem [thread:$0]  (!%p1357_p11), %s1355_s24, 64, %s189_s26, %s178_s30  }
  0x3f   : > { %s910_s5 = sshll.u32 %s1348_s11, 3  ;;  %s911_s7 = sshll.u32 %s1222_s18, 7 }
  0x40   : > { %s1388_s13 = scalar_lea.hbm %s1518_s1, %s911_s7  ;;  %s199_s14 = scalar_lea.vmem [#allocation6], %s910_s5 }
  0x41   : > { %s206_s20 = sshll.u32 %s199_s14, 4  ;;  %s196_s25 = scalar_lea.sflag [#allocation7], %s195_s29  ;;  %s207_s20 = int_to_ptr.vmem [resolvable:$true] %s206_s20 }
  0x42   : > { %s1122_s6 = scalar_lea.hbm %s1388_s13, 128  ;;  %s1127_s26 = scalar_lea.hbm %s1518_s1, 256 }
  0x43   : > { %p1123_p1 = scmp.ne.s32.totalorder %s1388_s13, %s1122_s6  ;;  %p1128_p8 = scmp.lt.s32.totalorder %s1388_s13, %s1518_s1 }
  0x44   : > { %p1129_p3 = scmp.lt.s32.totalorder %s1127_s26, %s1122_s6 }
  0x45   : > { %p1125_p4 = pnand %p1123_p1, %p1096_p7 }
  0x46   : > { %p1130_p10 = por %p1129_p3, %p1128_p8 }
  0x47   : > { %p1126_p6 = pneg %p1125_p4 }
  0x49   : > { %p1131_p2 = pnand %p1130_p10, %p1126_p6 }
  0x4b   : > { %1134 = shalt.err (!%p1131_p2)
}
  0x4c   : > { %s1135_s5 = scalar_lea.vmem %s207_s20, 128  ;;  %s1228_s29 = smov [#allocation6]  }
  0x4d   : > { %p1136_p12 = scmp.ne.s32.totalorder %s207_s20, %s1135_s5  ;;  %s1140_s8 = sshll.u32 %s1228_s29, 4  ;;  %s1141_s8 = int_to_ptr.vmem [resolvable:$false] %s1140_s8 }
  0x4e   : > { %s1142_s12 = scalar_lea.vmem %s1141_s8, 256  ;;  %p1143_p5 = scmp.lt.s32.totalorder %s207_s20, %s1141_s8 }
  0x4f   : > { %p1138_p13 = pnand %p1136_p12, %p1096_p7  ;;  %p1144_p9 = scmp.lt.s32.totalorder %s1142_s12, %s1135_s5 }
  0x51   : > { %p1139_p0 = pneg %p1138_p13  ;;  %p1145_p1 = por %p1144_p9, %p1143_p5 }
  0x53   : > { %p1146_p4 = pnand %p1145_p1, %p1139_p0 }
  0x55   : > { %1149 = shalt.err (!%p1146_p4)
}
  0x56   : > { %988 = dma.hbm_to_vmem [thread:$0]  (!%p1357_p11), %s1388_s13, 128, %s207_s20, %s196_s25  }
  0x57   : > { %p1533_p6 = scmp.ne.s32.totalorder %s1528_s23, 0 }
  0x58   : > { %s1413_s14 = sand.u32 (!%p1533_p6), 1, %s1214_s16   ;;  %p1534_p7 = scmp.ne.s32.totalorder (!%p1533_p6), %s1526_s21, 0 }
  0x59   : > { %215 = sbr.rel (%p1533_p6) target bundleno = 1212 (0x4bc), region = 36  ;;  %s913_s6 = sshll.u32 (!%p1533_p6), %s1413_s14, 2 }
  0x5a   : > { %s218_s11 = scalar_lea.sflag (!%p1533_p6), [#allocation4], %s1413_s14  ;;  %s221_s24 = scalar_lea.vmem (!%p1533_p6), [#allocation3], %s913_s6 }
  0x5e   : > { %1193 = dma.done.wait (%p1534_p7), %s218_s11, 64  }
  0x5f   : > { %1195 = vsyncadd (%p1534_p7), %s218_s11, 4294967232  ;;  %s226_s23 = sand.u32 1, %s1289_s19   ;;  %s914_s28 = sshll.u32 %s1413_s14, 3 }
  0x60   : > { %s227_s13 = scalar_lea.sflag [#allocation7], %s226_s23  ;;  %s1425_s20 = scalar_lea.vmem [#allocation6], %s914_s28 }
  0x61   : > { %1197 = dma.done.wait (%p1534_p7), %s227_s13, 128  }
  0x62   : > { %1199 = vsyncadd (%p1534_p7), %s227_s13, 4294967168  ;;  %p1535_p11 = scmp.eq.s32.totalorder %s1289_s19, 0 }
  0x64   : > { %1201 = dma.done.wait (%p1535_p11), [#allocation7], 256   ;;  %p1536_p8 = pmov %p1535_p11 }
  0x65   : > { %v1229_v0 = vmov 0.0   ;;  %vm1230_vm0 = vmmov 0   ;;  %v1050_v1 = vld [vmem:[#allocation8 + $0x8] sm:$0xff]   ;;  %v1051_v2 = vld [vmem:[#allocation8] sm:$0xff]   ;;  %vm282_vm1 = vcmask 261120   ;;  %v1231_v4 = vmov 65  }
  0x66   : > { %1203 = vsyncadd (%p1536_p8), [#allocation7], 4294967040  ;;  %940 = vmatprep.subr.bf16.mxu0 %v1229_v0  ;;  %944 = vmatprep.mubr.msk.bf16.mxu0 %vm1230_vm0, %v1229_v0  ;;  %v265_v3 = vld [vmem:[%s221_s24] sm:$0xf]  ;;  %v1232_v5 = vmov 64   ;;  %vm326_vm2 = vcmask 588800   ;;  %v371_v14 = vlaneseq }
  0x67   : > { %948 = vmatprep.subr.mxu1 %v1229_v0  ;;  %950 = vmatprep.mubr.msk.f32.mxu1 %vm1230_vm0, %v1229_v0  ;;  %s1233_s21 = smov 60   ;;  %v1234_v11 = vmov 66   ;;  %v1235_v12 = vmov 67   ;;  %v366_v36 = vld [vmem:[%s1425_s20] sm:$0xff]  ;;  %vm379_vm3 = vcmask 64512   ;;  %s1236_s25 = smov 96  }
  0x68   : > { %941 = vmatpush3.bf16.msra.mxu0 %v1050_v1  ;;  %1046 = vset.pattern.permute.xlu1 %v1231_v4  ;;  %v372_v16 = vshrl.u32 %v371_v14, 7  ;;  %s1237_s26 = smov 112   ;;  %s1238_s30 = smov 80   ;;  %vm773_vm4 = vcmask 130048   ;;  %vm776_vm5 = vcmask 392192   ;;  %vm786_vm6 = vcmask 523264  }
  0x69   : > { %942 = vmatprep.subr.bf16.mxu0 %v1229_v0  ;;  %1045 = vset.pattern.permute.xlu0 %v1232_v5  ;;  %s1239_s7 = smov 16   ;;  %s1240_s5 = smov 32  }
  0x6a   : > { %v373_v19 = vsub.s32 0, %v372_v16  ;;  %v470_v20 = vsub.s32 1, %v372_v16  ;;  %v569_v21 = vsub.s32 2, %v372_v16  ;;  %v668_v22 = vsub.s32 3, %v372_v16  ;;  %s1241_s29 = smov 48   ;;  %s926_s6 = sshll.u32 %s1289_s19, 7 }
  0x6b   : > { %s263_s11 = scalar_lea.vmem [#allocation9], %s914_s28  ;;  %s800_s20 = scalar_lea.hbm %s1521_s4, %s926_s6 }
  0x6c   : > { %943 = vmatpush3.bf16.msra.mxu0 %v1051_v2  ;;  %s802_s24 = sshll.u32 %s263_s11, 4  ;;  %p1537_p10 = scmp.ne.s32.totalorder %s1531_s10, 0  ;;  %s803_s24 = int_to_ptr.vmem [resolvable:$true] %s802_s24 }
  0x6f   : > { %945 = vmatmul.mubr.msk.bf16.vlgmr.msra.gmra.mxu0 %vm282_vm1, %v265_v3 }
 0x12f   : > { %v320_v6 = vpop.f32.mrf.mxu0 }
 0x130   : > { %327 = vst.msk [vmem:[#allocation2] sm:$0xff] %vm326_vm2, %v320_v6 }
 0x131   : > { %v946_v7 = vpop.f32.mrf.mxu0 }
 0x133   : > { %v323_v8 = vpop.f32.mrf.mxu0 }
 0x135   : > { %v947_v9 = vpop.f32.mrf.mxu0 }
 0x137   : > { %v1443_v10 = vld [vmem:[#allocation2] sm:$0xff] }
 0x138   : > { %465 = vperm.xlu1 %1046, %v1443_v10   ;;  %331 = vrot.lane.b32.xlu0 %v1443_v10, %s1233_s21  ;;  %s789_s21 = scalar_lea.sflag [#allocation5], %s1413_s14 }
 0x139   : > { %949 = vmatpush3.msra.mxu1 %v1443_v10 }
 0x13a   : > { %953 = vmatprep.subr.mxu1 %v1229_v0 }
 0x13c   : > { %1047 = vset.pattern.permute.xlu1 %v1234_v11  ;;  %368 = vperm.xlu0 %1045, %v1443_v10  }
 0x13d   : > { %564 = vperm.xlu1 %1047, %v1443_v10  }
 0x141   : > { %1048 = vset.pattern.permute.xlu1 %v1235_v12 }
 0x142   : > { %663 = vperm.xlu1 %1048, %v1443_v10  }
 0x1aa   : > { %v332_v13 = vpop.permute.xlu0 %331 }
 0x1ab   : > { %334 = vxpose.xlu0.b32.start.end [1/1] (short) (narrow) %v332_v13, 8 }
 0x1b3   : > { %v466_v15 = vpop.permute.xlu1 %465 }
 0x1b7   : > { %v369_v17 = vpop.permute.xlu0 %368 }
 0x1b8   : > { %v565_v18 = vpop.permute.xlu1 %564 }
 0x1bd   : > { %v664_v28 = vpop.permute.xlu1 %663 }
 0x1d4   : > { %1049 = vset.pattern.permute.xlu0 %v1235_v12 }
 0x227   : > { %v350_v23 = vpop.trf.xlu0 }
 0x228   : > { %v374_v24 = vrot.slane %v350_v23, %v373_v19  ;;  %v471_v25 = vrot.slane %v350_v23, %v470_v20  ;;  %v570_v26 = vrot.slane %v350_v23, %v569_v21  ;;  %v669_v27 = vrot.slane %v350_v23, %v668_v22 }
 0x22a   : > { %v472_v29 = vadd.f32 %v471_v25, %v466_v15  ;;  %v375_v30 = vadd.f32 %v374_v24, %v369_v17  ;;  %v571_v31 = vadd.f32 %v570_v26, %v565_v18  ;;  %v670_v32 = vadd.f32 %v669_v27, %v664_v28 }
 0x22c   : > { %v473_v33 = vmul.f32 0.2, %v472_v29  ;;  %v376_v34 = vmul.f32 0.2, %v375_v30  ;;  %v572_v35 = vmul.f32 0.2, %v571_v31 }
 0x22d   : > { %v671_v40 = vmul.f32 0.2, %v670_v32 }
 0x22e   : > { %v474_v37 = vmax.f32 %v472_v29, %v473_v33  ;;  %v377_v38 = vmax.f32 %v375_v30, %v376_v34  ;;  %v573_v39 = vmax.f32 %v571_v31, %v572_v35 }
 0x22f   : > { %v672_v46 = vmax.f32 %v670_v32, %v671_v40  ;;  %v924_v32 = vld [vmem:[%s1520_s3] ss:$0 sm:$0xff] }
 0x230   : > { %v475_v41 = vadd.f32 %v474_v37, %v366_v36  ;;  %v378_v42 = vadd.f32 %v377_v38, %v366_v36  ;;  %v574_v45 = vadd.f32 %v573_v39, %v366_v36 }
 0x231   : > { %v673_v48 = vadd.f32 %v672_v46, %v366_v36 }
 0x232   : > { %v476_v43 = vsel %vm379_vm3, %v475_v41, -inf  ;;  %v380_v44 = vsel %vm379_vm3, %v378_v42, -inf  ;;  %v575_v47 = vsel %vm379_vm3, %v574_v45, -inf }
 0x233   : > { %477 = vmax.xlane.f32.xlu0 %v476_v43  ;;  %381 = vmax.xlane.f32.xlu1 %v380_v44  ;;  %v674_v49 = vsel %vm379_vm3, %v673_v48, -inf }
 0x237   : > { %576 = vmax.xlane.f32.xlu1 %v575_v47 }
 0x23b   : > { %675 = vmax.xlane.f32.xlu1 %v674_v49 }
 0x249   : > { %586 = vrot.lane.b32.xlu0 %v1443_v10, %s1236_s25  ;;  %s1150_s25 = scalar_lea.vmem %s803_s24, 128 }
 0x24a   : > { %p1151_p3 = scmp.ne.s32.totalorder %s803_s24, %s1150_s25 }
 0x24c   : > { %487 = vrot.lane.b32.xlu1 %v1443_v10, %s1237_s26  ;;  %p1152_p2 = pnand %p1151_p3, %p1537_p10  ;;  %s1242_s26 = smov [#allocation9]  }
 0x24d   : > { %s1154_s19 = sshll.u32 %s1242_s26, 4  ;;  %s1155_s19 = int_to_ptr.vmem [resolvable:$false] %s1154_s19 }
 0x24e   : > { %p1153_p12 = pneg %p1152_p2  ;;  %s1156_s28 = scalar_lea.vmem %s1155_s19, 256 }
 0x24f   : > { %p1157_p13 = scmp.lt.s32.totalorder %s803_s24, %s1155_s19  ;;  %p1158_p0 = scmp.lt.s32.totalorder %s1156_s28, %s1150_s25 }
 0x251   : > { %p1159_p5 = por %p1158_p0, %p1157_p13 }
 0x253   : > { %p1160_p9 = pnand %p1159_p5, %p1153_p12 }
 0x2bc   : > { %v478_v50 = vpop.xlane.xlu0 %477  ;;  %v382_v51 = vpop.xlane.xlu1 %381 }
 0x2bd   : > { %v479_v52 = vsub.f32 %v475_v41, %v478_v50  ;;  %v383_v53 = vsub.f32 %v378_v42, %v382_v51 }
 0x2bf   : > { %v384_v54 = vmul.f32 1.442695, %v383_v53  ;;  %v480_v55 = vmul.f32 1.442695, %v479_v52 }
 0x2c0   : > { %v577_v56 = vpop.xlane.xlu1 %576  ;;  %v587_v16 = vpop.permute.xlu0 %586 }
 0x2c1   : > { %v578_v57 = vsub.f32 %v574_v45, %v577_v56  ;;  %1052 = vpow2.f32 %v384_v54 }
 0x2c2   : > { %1054 = vpow2.f32 %v480_v55 }
 0x2c3   : > { %v579_v58 = vmul.f32 1.442695, %v578_v57 }
 0x2c4   : > { %v676_v59 = vpop.xlane.xlu1 %675 }
 0x2c5   : > { %v677_v60 = vsub.f32 %v673_v48, %v676_v59  ;;  %1056 = vpow2.f32 %v579_v58 }
 0x2c7   : > { %v678_v61 = vmul.f32 1.442695, %v677_v60 }
 0x2c8   : > { %v488_v7 = vpop.permute.xlu1 %487 }
 0x2c9   : > { %1058 = vpow2.f32 %v678_v61 }
 0x2ce   : > { %v1053_v62 = vpop.eup %1052 }
 0x2cf   : > { %v386_v63 = vsel %vm379_vm3, %v1053_v62, 0.0  ;;  %v1055_v1 = vpop.eup %1054 }
 0x2d0   : > { %387 = vadd.xlane.f32.xlu1 %v386_v63  ;;  %v482_v2 = vsel %vm379_vm3, %v1055_v1, 0.0 }
 0x2d2   : > { %v1057_v3 = vpop.eup %1056 }
 0x2d3   : > { %v581_v4 = vsel %vm379_vm3, %v1057_v3, 0.0 }
 0x2d4   : > { %483 = vadd.xlane.f32.xlu1 %v482_v2 }
 0x2d6   : > { %v1059_v5 = vpop.eup %1058 }
 0x2d7   : > { %v680_v6 = vsel %vm379_vm3, %v1059_v5, 0.0 }
 0x2d8   : > { %582 = vadd.xlane.f32.xlu1 %v581_v4 }
 0x2dc   : > { %681 = vadd.xlane.f32.xlu1 %v680_v6 }
 0x2ed   : > { %685 = vrot.lane.b32.xlu1 %v1443_v10, %s1238_s30 }
 0x359   : > { %v388_v8 = vpop.xlane.xlu1 %387 }
 0x35a   : > { %1060 = vrcp.f32 %v388_v8 }
 0x35d   : > { %v484_v9 = vpop.xlane.xlu1 %483 }
 0x35e   : > { %1062 = vrcp.f32 %v484_v9 }
 0x361   : > { %v583_v11 = vpop.xlane.xlu1 %582 }
 0x362   : > { %1064 = vrcp.f32 %v583_v11 }
 0x365   : > { %v682_v12 = vpop.xlane.xlu1 %681 }
 0x366   : > { %1066 = vrcp.f32 %v682_v12 }
 0x367   : > { %v1061_v13 = vpop.eup %1060 }
 0x368   : > { %v390_v14 = vmul.f32 %v1061_v13, %v1053_v62 }
 0x369   : > { %v686_v19 = vpop.permute.xlu1 %685 }
 0x36a   : > { %951 = vmatmul.mubr.msk.f32.vlgmr.msra.gmra.mxu1 %vm379_vm3, %v390_v14 }
 0x36b   : > { %v1063_v15 = vpop.eup %1062  ;;  %954 = vmatpush3.msra.mxu1 %v488_v7  ;;  %955 = vmatprep.mubr.msk.f32.mxu1 %vm1230_vm0, %v1229_v0 }
 0x36c   : > { %958 = vmatprep.subr.mxu1 %v1229_v0  ;;  %v486_v10 = vmul.f32 %v1063_v15, %v1055_v1 }
 0x36e   : > { %956 = vmatmul.mubr.msk.f32.vlgmr.msra.gmra.mxu1 %vm379_vm3, %v486_v10 }
 0x36f   : > { %v1065_v17 = vpop.eup %1064  ;;  %959 = vmatpush3.msra.mxu1 %v587_v16  ;;  %960 = vmatprep.mubr.msk.f32.mxu1 %vm1230_vm0, %v1229_v0 }
 0x370   : > { %963 = vmatprep.subr.mxu1 %v1229_v0  ;;  %v585_v18 = vmul.f32 %v1065_v17, %v1057_v3 }
 0x372   : > { %961 = vmatmul.mubr.msk.f32.vlgmr.msra.gmra.mxu1 %vm379_vm3, %v585_v18 }
 0x373   : > { %v1067_v20 = vpop.eup %1066  ;;  %964 = vmatpush3.msra.mxu1 %v686_v19  ;;  %965 = vmatprep.mubr.msk.f32.mxu1 %vm1230_vm0, %v1229_v0 }
 0x374   : > { %v684_v21 = vmul.f32 %v1067_v20, %v1059_v5 }
 0x376   : > { %966 = vmatmul.mubr.msk.f32.vlgmr.msra.gmra.mxu1 %vm379_vm3, %v684_v21 }
 0x42a   : > { %v460_v22 = vpop.f32.mrf.mxu1 }
 0x42c   : > { %v952_v23 = vpop.f32.mrf.mxu1 }
 0x42e   : > { %v559_v24 = vpop.f32.mrf.mxu1 }
 0x42f   : > { %762 = vrot.lane.b32.xlu1 %v559_v24, %s1239_s7 }
 0x430   : > { %v957_v25 = vpop.f32.mrf.mxu1 }
 0x432   : > { %v658_v26 = vpop.f32.mrf.mxu1 }
 0x433   : > { %766 = vrot.lane.b32.xlu1 %v658_v26, %s1240_s5 }
 0x434   : > { %v962_v27 = vpop.f32.mrf.mxu1 }
 0x436   : > { %v757_v28 = vpop.f32.mrf.mxu1 }
 0x437   : > { %770 = vrot.lane.b32.xlu1 %v757_v28, %s1241_s29 }
 0x438   : > { %v967_v29 = vpop.f32.mrf.mxu1 }
 0x4a1   : > { %v763_v0 = vpop.permute.xlu1 %762 }
 0x4a2   : > { %v774_v31 = vsel %vm773_vm4, %v460_v22, %v763_v0 }
 0x4a5   : > { %v767_v30 = vpop.permute.xlu1 %766 }
 0x4a6   : > { %v775_v33 = vsel %vm282_vm1, %v774_v31, %v767_v30 }
 0x4a9   : > { %v771_v34 = vpop.permute.xlu1 %770 }
 0x4aa   : > { %v777_v35 = vsel %vm776_vm5, %v775_v33, %v771_v34 }
 0x4ab   : > { %v784_v36 = vadd.f32 %v924_v32, %v777_v35 }
 0x4ad   : > { %v785_v37 = vmax.f32 %v784_v36, 0.0 }
 0x4af   : > { %787 = vst.msk [vmem:[%s263_s11] sm:$0xff] %vm786_vm6, %v785_v37 }
 0x4b0   : > { %1163 = shalt.err (!%p1160_p9)
}
 0x4b1   : > { %s1164_s30 = scalar_lea.hbm %s800_s20, 128  ;;  %s1168_s5 = scalar_lea.hbm %s1521_s4, 256 }
 0x4b2   : > { %p1165_p1 = scmp.ne.s32.totalorder %s800_s20, %s1164_s30  ;;  %p1169_p7 = scmp.lt.s32.totalorder %s800_s20, %s1521_s4 }
 0x4b3   : > { %p1170_p11 = scmp.lt.s32.totalorder %s1168_s5, %s1164_s30 }
 0x4b4   : > { %p1166_p4 = pnand %p1165_p1, %p1537_p10 }
 0x4b5   : > { %p1171_p8 = por %p1170_p11, %p1169_p7 }
 0x4b6   : > { %p1167_p6 = pneg %p1166_p4 }
 0x4b8   : > { %p1172_p3 = pnand %p1171_p8, %p1167_p6 }
 0x4ba   : > { %1175 = shalt.err (!%p1172_p3)
}
 0x4bb   : > { %976 = dma.vmem_to_hbm [thread:$0]  (%p1537_p10), %s803_s24, 128, %s800_s20, %s789_s21  }
 0x4bc PF: > { %s814_s12 = sand.u32 1, %s1210_s15   ;;  %p1538_p2 = scmp.ne.s32.totalorder %s1527_s22, 0 }
 0x4bd   : > { %p1539_p12 = scmp.ge.s32.totalorder %s1222_s18, 2  ;;  %s815_s6 = scalar_lea.sflag [#allocation5], %s814_s12 }
 0x4bf   : > { %p990_p13 = pnand %p1539_p12, %p1538_p2 }
 0x4c1   : > { %p991_p0 = pneg %p990_p13 }
 0x4c3   : > { %1205 = dma.done.wait (%p991_p0), %s815_s6, 128  }
 0x4c4   : > { %1207 = vsyncadd (%p991_p0), %s815_s6, 4294967168  ;;  %p20_p5 = scmp.ge.s32.totalorder %s1322_s27, 4   ;;  %s1540_s15 = smov %s1214_s16 }
 0x4c5   : > { %s1541_s16 = smov %s1218_s17  ;;  %s1542_s17 = smov %s1339_s9 }
 0x4c6   : > { %s1543_s18 = smov %s1322_s27  ;;  %22 = sbr.rel (!%p20_p5) target bundleno = 7 (0x7), region = 98 }
 0x4cb   :  { %820 = vsyncpa [#allocation4], 1 }
 0x4cc   :  { %822 = vsyncpa [#allocation4 + $0x1], 1 }
 0x4cd   :  { %823 = vsyncpa [#allocation7], 1 }
 0x4ce   :  { %825 = vsyncpa [#allocation7 + $0x1], 1 }
 0x4cf   :  { %826 = vsyncpa [#allocation5], 1 }
 0x4d0   :  { %828 = vsyncpa [#allocation5 + $0x1], 1 }

</bundles_post_ra>
